<compile_context>
chip_gen: v7x
topology: tpu7x:2x2x1
jax: 0.10.0
libtpu: 0.0.40
codegen_flags: <defaults>
</compile_context>

<pallas_src>
import math
import jax
import jax.numpy as jnp
from jax import lax
from jax.experimental import pallas as pl
from jax.experimental.pallas import tpu as pltpu

# ---- problem sizes (small, consistent with the module) ----
B = 2          # batch
S = 8          # sequence length
D = 32         # d_model
H = 4          # nhead
HD = D // H    # head dim
FF = 4 * D     # feedforward hidden
EPS = 1e-5     # LayerNorm eps (PyTorch default)


def transformer_block_kernel(
    x_ref,      # (B*S, D)
    wqkv_ref,   # (D, 3D)   packed & transposed in_proj_weight, Q-scale folded in
    bqkv_ref,   # (1, 3D)   packed in_proj_bias, Q-scale folded in
    wo_ref,     # (D, D)    out_proj.weight, pre-transposed
    bo_ref,     # (1, D)
    g1_ref,     # (1, D)    norm1.weight
    be1_ref,    # (1, D)    norm1.bias
    w1_ref,     # (D, FF)   feedforward[0].weight, pre-transposed (lane-dense)
    b1_ref,     # (1, FF)
    w2_ref,     # (FF, D)   feedforward[2].weight, pre-transposed
    b2_ref,     # (1, D)
    g2_ref,     # (1, D)    norm2.weight
    be2_ref,    # (1, D)    norm2.bias
    o_ref,      # (B*S, D)
):
    x = x_ref[...]                                             # (B*S, D)

    # --- fused QKV projection: a single MXU matmul, scale already folded in ---
    qkv = jnp.dot(x, wqkv_ref[...], preferred_element_type=jnp.float32) + bqkv_ref[...]
    q = qkv[:, 0:D].reshape(B, S, D)          # Q is pre-scaled by 1/sqrt(HD)
    k = qkv[:, D:2 * D].reshape(B, S, D)
    v = qkv[:, 2 * D:3 * D].reshape(B, S, D)

    # --- attention: per-head loop, but batched over the batch dim via 3-D einsums ---
    ctx_parts = []
    for h in range(H):
        sl = slice(h * HD, (h + 1) * HD)
        qh = q[:, :, sl]                                       # (B, S, HD)
        kh = k[:, :, sl]
        vh = v[:, :, sl]
        s = jnp.einsum("bqd,bkd->bqk", qh, kh,
                       preferred_element_type=jnp.float32)     # (B, S, S)
        s = s - jnp.max(s, axis=-1, keepdims=True)
        p = jnp.exp(s)
        l = jnp.sum(p, axis=-1, keepdims=True)                 # (B, S, 1)
        ch = jnp.einsum("bqk,bkd->bqd", p, vh,
                        preferred_element_type=jnp.float32)    # (B, S, HD)
        # deferred softmax normalization with an exact reciprocal (EUP slot)
        ctx_parts.append(ch * pl.reciprocal(l, approx=False))
    ctx = jnp.concatenate(ctx_parts, axis=-1).reshape(B * S, D)

    # --- output projection + residual + LayerNorm1 ---
    attn = jnp.dot(ctx, wo_ref[...], preferred_element_type=jnp.float32) + bo_ref[...]
    x1 = x + attn
    mu1 = jnp.mean(x1, axis=-1, keepdims=True)
    var1 = jnp.mean((x1 - mu1) ** 2, axis=-1, keepdims=True)
    y1 = (x1 - mu1) * lax.rsqrt(var1 + EPS) * g1_ref[...] + be1_ref[...]

    # --- feedforward (Linear -> ReLU -> Linear) + residual + LayerNorm2 ---
    h1 = jnp.dot(y1, w1_ref[...], preferred_element_type=jnp.float32) + b1_ref[...]
    h1 = jnp.maximum(h1, 0.0)
    ffo = jnp.dot(h1, w2_ref[...], preferred_element_type=jnp.float32) + b2_ref[...]
    x2 = y1 + ffo
    mu2 = jnp.mean(x2, axis=-1, keepdims=True)
    var2 = jnp.mean((x2 - mu2) ** 2, axis=-1, keepdims=True)
    y2 = (x2 - mu2) * lax.rsqrt(var2 + EPS) * g2_ref[...] + be2_ref[...]

    o_ref[...] = y2.astype(o_ref.dtype)


def pack_params(params):
    """Host-side repack (amortized, outside the kernel): transpose every weight and
    fold the 1/sqrt(HD) attention scale into the Q slice of the fused QKV params."""
    (wqkv, bqkv, wo, bo, g1, be1, w1, b1, w2, b2, g2, be2) = params
    scale = 1.0 / math.sqrt(HD)
    qscale = jnp.concatenate(
        [jnp.full((D,), scale, jnp.float32), jnp.ones((2 * D,), jnp.float32)])
    wqkv_t = (wqkv * qscale[:, None]).T          # (D, 3D), Q columns pre-scaled
    bqkv_s = bqkv * qscale[None, :]              # (1, 3D)
    return (wqkv_t, bqkv_s, wo.T, bo, g1, be1, w1.T, b1, w2.T, b2, g2, be2)


def transformer_block(x, packed_params):
    """x: (B, S, D); packed_params: output of pack_params."""
    xf = x.reshape(B * S, D)                     # row-wise flatten (outside kernel)
    vmem = pl.BlockSpec(memory_space=pltpu.MemorySpace.VMEM)   # whole array in VMEM
    out = pl.pallas_call(
        transformer_block_kernel,
        out_shape=jax.ShapeDtypeStruct((B * S, D), jnp.float32),
        in_specs=[vmem] * 13,
        out_specs=vmem,
    )(xf, *packed_params)
    return out.reshape(B, S, D)


# ---- pure-JAX reference (PyTorch semantics, original param layout) ----
def reference(x, params):
    (wqkv, bqkv, wo, bo, g1, be1, w1, b1, w2, b2, g2, be2) = params
    b3 = bqkv[0]
    q = x @ wqkv[0:D].T + b3[0:D]
    k = x @ wqkv[D:2 * D].T + b3[D:2 * D]
    v = x @ wqkv[2 * D:3 * D].T + b3[2 * D:3 * D]
    qh = q.reshape(B, S, H, HD).transpose(0, 2, 1, 3)
    kh = k.reshape(B, S, H, HD).transpose(0, 2, 1, 3)
    vh = v.reshape(B, S, H, HD).transpose(0, 2, 1, 3)
    s = jnp.einsum("bhqd,bhkd->bhqk", qh, kh) / math.sqrt(HD)
    p = jax.nn.softmax(s, axis=-1)
    ctx = jnp.einsum("bhqk,bhkd->bhqd", p, vh).transpose(0, 2, 1, 3).reshape(B, S, D)
    attn = ctx @ wo.T + bo[0]
    x1 = x + attn

    def ln(z, g, bb):
        mu = jnp.mean(z, -1, keepdims=True)
        var = jnp.mean((z - mu) ** 2, -1, keepdims=True)
        return (z - mu) * lax.rsqrt(var + EPS) * g[0] + bb[0]

    y1 = ln(x1, g1, be1)
    hh = jnp.maximum(y1 @ w1.T + b1[0], 0.0)
    ffo = hh @ w2.T + b2[0]
    return ln(y1 + ffo, g2, be2)


def init_params(key):
    ks = jax.random.split(key, 8)
    sc = 0.05
    wqkv = jax.random.normal(ks[0], (3 * D, D), jnp.float32) * sc
    bqkv = jax.random.normal(ks[1], (1, 3 * D), jnp.float32) * sc
    wo = jax.random.normal(ks[2], (D, D), jnp.float32) * sc
    bo = jax.random.normal(ks[3], (1, D), jnp.float32) * sc
    g1 = jnp.ones((1, D), jnp.float32)
    be1 = jnp.zeros((1, D), jnp.float32)
    w1 = jax.random.normal(ks[4], (FF, D), jnp.float32) * sc
    b1 = jax.random.normal(ks[5], (1, FF), jnp.float32) * sc
    w2 = jax.random.normal(ks[6], (D, FF), jnp.float32) * sc
    b2 = jax.random.normal(ks[7], (1, D), jnp.float32) * sc
    g2 = jnp.ones((1, D), jnp.float32)
    be2 = jnp.zeros((1, D), jnp.float32)
    return (wqkv, bqkv, wo, bo, g1, be1, w1, b1, w2, b2, g2, be2)


if __name__ == "__main__":
    key = jax.random.PRNGKey(0)
    kx, kp = jax.random.split(key)
    x = jax.random.normal(kx, (B, S, D), jnp.float32)
    params = init_params(kp)
    packed = pack_params(params)

    out = transformer_block(x, packed)
    out = jax.block_until_ready(out)

    ref = reference(x, params)
    assert out.shape == (B, S, D)
    assert jnp.allclose(out, ref, rtol=1e-4, atol=1e-4), "mismatch vs pure-JAX reference"
    print("KERNEL_OK")
</pallas_src>

<mosaic_0001>
module attributes {stable_mosaic.version = 11 : i64} {
  func.func @transformer_block_kernel(%arg0: memref<16x32xf32, #tpu.memory_space<vmem>>, %arg1: memref<32x96xf32, #tpu.memory_space<vmem>>, %arg2: memref<1x96xf32, #tpu.memory_space<vmem>>, %arg3: memref<32x32xf32, #tpu.memory_space<vmem>>, %arg4: memref<1x32xf32, #tpu.memory_space<vmem>>, %arg5: memref<1x32xf32, #tpu.memory_space<vmem>>, %arg6: memref<1x32xf32, #tpu.memory_space<vmem>>, %arg7: memref<32x128xf32, #tpu.memory_space<vmem>>, %arg8: memref<1x128xf32, #tpu.memory_space<vmem>>, %arg9: memref<128x32xf32, #tpu.memory_space<vmem>>, %arg10: memref<1x32xf32, #tpu.memory_space<vmem>>, %arg11: memref<1x32xf32, #tpu.memory_space<vmem>>, %arg12: memref<1x32xf32, #tpu.memory_space<vmem>>, %arg13: memref<16x32xf32, #tpu.memory_space<vmem>>) attributes {dimension_semantics = [], scalar_prefetch = 0 : i64, scratch_operands = 0 : i64, tpu.core_type = #tpu.core_type<tc>} {
    %c0 = arith.constant 0 : index
    %c0_0 = arith.constant 0 : index
    %0 = vector.load %arg0[%c0, %c0_0] : memref<16x32xf32, #tpu.memory_space<vmem>>, vector<16x32xf32>
    %c0_1 = arith.constant 0 : index
    %c0_2 = arith.constant 0 : index
    %1 = vector.load %arg1[%c0_1, %c0_2] : memref<32x96xf32, #tpu.memory_space<vmem>>, vector<32x96xf32>
    %cst = arith.constant dense<0.000000e+00> : vector<16x96xf32>
    %2 = tpu.matmul %0, %1, %cst {dimension_numbers = #tpu.dot_dimension_numbers<[1], [0], [0], [1], [0, 0, 1, 1], [], []>} : vector<16x32xf32>, vector<32x96xf32>, vector<16x96xf32> -> vector<16x96xf32>
    %c0_3 = arith.constant 0 : index
    %c0_4 = arith.constant 0 : index
    %3 = vector.load %arg2[%c0_3, %c0_4] : memref<1x96xf32, #tpu.memory_space<vmem>>, vector<1x96xf32>
    %4 = vector.broadcast %3 : vector<1x96xf32> to vector<16x96xf32>
    %5 = arith.addf %2, %4 : vector<16x96xf32>
    %6 = vector.extract_strided_slice %5 {offsets = [0, 0], sizes = [16, 32], strides = [1, 1]} : vector<16x96xf32> to vector<16x32xf32>
    %7 = vector.shape_cast %6 : vector<16x32xf32> to vector<2x8x32xf32>
    %8 = vector.extract_strided_slice %5 {offsets = [0, 32], sizes = [16, 32], strides = [1, 1]} : vector<16x96xf32> to vector<16x32xf32>
    %9 = vector.shape_cast %8 : vector<16x32xf32> to vector<2x8x32xf32>
    %10 = vector.extract_strided_slice %5 {offsets = [0, 64], sizes = [16, 32], strides = [1, 1]} : vector<16x96xf32> to vector<16x32xf32>
    %11 = vector.shape_cast %10 : vector<16x32xf32> to vector<2x8x32xf32>
    %12 = vector.extract_strided_slice %7 {offsets = [0, 0, 0], sizes = [2, 8, 8], strides = [1, 1, 1]} : vector<2x8x32xf32> to vector<2x8x8xf32>
    %13 = vector.extract_strided_slice %9 {offsets = [0, 0, 0], sizes = [2, 8, 8], strides = [1, 1, 1]} : vector<2x8x32xf32> to vector<2x8x8xf32>
    %14 = vector.extract_strided_slice %11 {offsets = [0, 0, 0], sizes = [2, 8, 8], strides = [1, 1, 1]} : vector<2x8x32xf32> to vector<2x8x8xf32>
    "tpu.trace_start"() <{level = 10 : i32, message = "bqd,bkd->bqk"}> : () -> ()
    %cst_5 = arith.constant dense<0.000000e+00> : vector<2x8x8xf32>
    %15 = tpu.matmul %12, %13, %cst_5 {dimension_numbers = #tpu.dot_dimension_numbers<[2], [2], [1], [1], [0, 0, 0, 1, 1, 1], [0], [0]>} : vector<2x8x8xf32>, vector<2x8x8xf32>, vector<2x8x8xf32> -> vector<2x8x8xf32>
    "tpu.trace_stop"() : () -> ()
    %cst_6 = arith.constant dense<0xFF800000> : vector<2x8xf32>
    %16 = vector.multi_reduction <maximumf>, %15, %cst_6 [2] : vector<2x8x8xf32> to vector<2x8xf32>
    %17 = vector.shape_cast %16 : vector<2x8xf32> to vector<2x8x1xf32>
    %18 = vector.broadcast %17 : vector<2x8x1xf32> to vector<2x8x8xf32>
    %19 = arith.subf %15, %18 : vector<2x8x8xf32>
    %20 = math.exp %19 : vector<2x8x8xf32>
    %cst_7 = arith.constant dense<0.000000e+00> : vector<2x8xf32>
    %21 = vector.multi_reduction <add>, %20, %cst_7 [2] : vector<2x8x8xf32> to vector<2x8xf32>
    %22 = vector.shape_cast %21 : vector<2x8xf32> to vector<2x8x1xf32>
    "tpu.trace_start"() <{level = 10 : i32, message = "bqk,bkd->bqd"}> : () -> ()
    %cst_8 = arith.constant dense<0.000000e+00> : vector<2x8x8xf32>
    %23 = tpu.matmul %20, %14, %cst_8 {dimension_numbers = #tpu.dot_dimension_numbers<[2], [1], [1], [2], [0, 0, 0, 1, 1, 2], [0], [0]>} : vector<2x8x8xf32>, vector<2x8x8xf32>, vector<2x8x8xf32> -> vector<2x8x8xf32>
    "tpu.trace_stop"() : () -> ()
    %24 = tpu.reciprocal %22 : vector<2x8x1xf32> -> vector<2x8x1xf32>
    %25 = vector.broadcast %24 : vector<2x8x1xf32> to vector<2x8x8xf32>
    %26 = arith.mulf %23, %25 : vector<2x8x8xf32>
    %27 = vector.extract_strided_slice %7 {offsets = [0, 0, 8], sizes = [2, 8, 8], strides = [1, 1, 1]} : vector<2x8x32xf32> to vector<2x8x8xf32>
    %28 = vector.extract_strided_slice %9 {offsets = [0, 0, 8], sizes = [2, 8, 8], strides = [1, 1, 1]} : vector<2x8x32xf32> to vector<2x8x8xf32>
    %29 = vector.extract_strided_slice %11 {offsets = [0, 0, 8], sizes = [2, 8, 8], strides = [1, 1, 1]} : vector<2x8x32xf32> to vector<2x8x8xf32>
    "tpu.trace_start"() <{level = 10 : i32, message = "bqd,bkd->bqk"}> : () -> ()
    %cst_9 = arith.constant dense<0.000000e+00> : vector<2x8x8xf32>
    %30 = tpu.matmul %27, %28, %cst_9 {dimension_numbers = #tpu.dot_dimension_numbers<[2], [2], [1], [1], [0, 0, 0, 1, 1, 1], [0], [0]>} : vector<2x8x8xf32>, vector<2x8x8xf32>, vector<2x8x8xf32> -> vector<2x8x8xf32>
    "tpu.trace_stop"() : () -> ()
    %cst_10 = arith.constant dense<0xFF800000> : vector<2x8xf32>
    %31 = vector.multi_reduction <maximumf>, %30, %cst_10 [2] : vector<2x8x8xf32> to vector<2x8xf32>
    %32 = vector.shape_cast %31 : vector<2x8xf32> to vector<2x8x1xf32>
    %33 = vector.broadcast %32 : vector<2x8x1xf32> to vector<2x8x8xf32>
    %34 = arith.subf %30, %33 : vector<2x8x8xf32>
    %35 = math.exp %34 : vector<2x8x8xf32>
    %cst_11 = arith.constant dense<0.000000e+00> : vector<2x8xf32>
    %36 = vector.multi_reduction <add>, %35, %cst_11 [2] : vector<2x8x8xf32> to vector<2x8xf32>
    %37 = vector.shape_cast %36 : vector<2x8xf32> to vector<2x8x1xf32>
    "tpu.trace_start"() <{level = 10 : i32, message = "bqk,bkd->bqd"}> : () -> ()
    %cst_12 = arith.constant dense<0.000000e+00> : vector<2x8x8xf32>
    %38 = tpu.matmul %35, %29, %cst_12 {dimension_numbers = #tpu.dot_dimension_numbers<[2], [1], [1], [2], [0, 0, 0, 1, 1, 2], [0], [0]>} : vector<2x8x8xf32>, vector<2x8x8xf32>, vector<2x8x8xf32> -> vector<2x8x8xf32>
    "tpu.trace_stop"() : () -> ()
    %39 = tpu.reciprocal %37 : vector<2x8x1xf32> -> vector<2x8x1xf32>
    %40 = vector.broadcast %39 : vector<2x8x1xf32> to vector<2x8x8xf32>
    %41 = arith.mulf %38, %40 : vector<2x8x8xf32>
    %42 = vector.extract_strided_slice %7 {offsets = [0, 0, 16], sizes = [2, 8, 8], strides = [1, 1, 1]} : vector<2x8x32xf32> to vector<2x8x8xf32>
    %43 = vector.extract_strided_slice %9 {offsets = [0, 0, 16], sizes = [2, 8, 8], strides = [1, 1, 1]} : vector<2x8x32xf32> to vector<2x8x8xf32>
    %44 = vector.extract_strided_slice %11 {offsets = [0, 0, 16], sizes = [2, 8, 8], strides = [1, 1, 1]} : vector<2x8x32xf32> to vector<2x8x8xf32>
    "tpu.trace_start"() <{level = 10 : i32, message = "bqd,bkd->bqk"}> : () -> ()
    %cst_13 = arith.constant dense<0.000000e+00> : vector<2x8x8xf32>
    %45 = tpu.matmul %42, %43, %cst_13 {dimension_numbers = #tpu.dot_dimension_numbers<[2], [2], [1], [1], [0, 0, 0, 1, 1, 1], [0], [0]>} : vector<2x8x8xf32>, vector<2x8x8xf32>, vector<2x8x8xf32> -> vector<2x8x8xf32>
    "tpu.trace_stop"() : () -> ()
    %cst_14 = arith.constant dense<0xFF800000> : vector<2x8xf32>
    %46 = vector.multi_reduction <maximumf>, %45, %cst_14 [2] : vector<2x8x8xf32> to vector<2x8xf32>
    %47 = vector.shape_cast %46 : vector<2x8xf32> to vector<2x8x1xf32>
    %48 = vector.broadcast %47 : vector<2x8x1xf32> to vector<2x8x8xf32>
    %49 = arith.subf %45, %48 : vector<2x8x8xf32>
    %50 = math.exp %49 : vector<2x8x8xf32>
    %cst_15 = arith.constant dense<0.000000e+00> : vector<2x8xf32>
    %51 = vector.multi_reduction <add>, %50, %cst_15 [2] : vector<2x8x8xf32> to vector<2x8xf32>
    %52 = vector.shape_cast %51 : vector<2x8xf32> to vector<2x8x1xf32>
    "tpu.trace_start"() <{level = 10 : i32, message = "bqk,bkd->bqd"}> : () -> ()
    %cst_16 = arith.constant dense<0.000000e+00> : vector<2x8x8xf32>
    %53 = tpu.matmul %50, %44, %cst_16 {dimension_numbers = #tpu.dot_dimension_numbers<[2], [1], [1], [2], [0, 0, 0, 1, 1, 2], [0], [0]>} : vector<2x8x8xf32>, vector<2x8x8xf32>, vector<2x8x8xf32> -> vector<2x8x8xf32>
    "tpu.trace_stop"() : () -> ()
    %54 = tpu.reciprocal %52 : vector<2x8x1xf32> -> vector<2x8x1xf32>
    %55 = vector.broadcast %54 : vector<2x8x1xf32> to vector<2x8x8xf32>
    %56 = arith.mulf %53, %55 : vector<2x8x8xf32>
    %57 = vector.extract_strided_slice %7 {offsets = [0, 0, 24], sizes = [2, 8, 8], strides = [1, 1, 1]} : vector<2x8x32xf32> to vector<2x8x8xf32>
    %58 = vector.extract_strided_slice %9 {offsets = [0, 0, 24], sizes = [2, 8, 8], strides = [1, 1, 1]} : vector<2x8x32xf32> to vector<2x8x8xf32>
    %59 = vector.extract_strided_slice %11 {offsets = [0, 0, 24], sizes = [2, 8, 8], strides = [1, 1, 1]} : vector<2x8x32xf32> to vector<2x8x8xf32>
    "tpu.trace_start"() <{level = 10 : i32, message = "bqd,bkd->bqk"}> : () -> ()
    %cst_17 = arith.constant dense<0.000000e+00> : vector<2x8x8xf32>
    %60 = tpu.matmul %57, %58, %cst_17 {dimension_numbers = #tpu.dot_dimension_numbers<[2], [2], [1], [1], [0, 0, 0, 1, 1, 1], [0], [0]>} : vector<2x8x8xf32>, vector<2x8x8xf32>, vector<2x8x8xf32> -> vector<2x8x8xf32>
    "tpu.trace_stop"() : () -> ()
    %cst_18 = arith.constant dense<0xFF800000> : vector<2x8xf32>
    %61 = vector.multi_reduction <maximumf>, %60, %cst_18 [2] : vector<2x8x8xf32> to vector<2x8xf32>
    %62 = vector.shape_cast %61 : vector<2x8xf32> to vector<2x8x1xf32>
    %63 = vector.broadcast %62 : vector<2x8x1xf32> to vector<2x8x8xf32>
    %64 = arith.subf %60, %63 : vector<2x8x8xf32>
    %65 = math.exp %64 : vector<2x8x8xf32>
    %cst_19 = arith.constant dense<0.000000e+00> : vector<2x8xf32>
    %66 = vector.multi_reduction <add>, %65, %cst_19 [2] : vector<2x8x8xf32> to vector<2x8xf32>
    %67 = vector.shape_cast %66 : vector<2x8xf32> to vector<2x8x1xf32>
    "tpu.trace_start"() <{level = 10 : i32, message = "bqk,bkd->bqd"}> : () -> ()
    %cst_20 = arith.constant dense<0.000000e+00> : vector<2x8x8xf32>
    %68 = tpu.matmul %65, %59, %cst_20 {dimension_numbers = #tpu.dot_dimension_numbers<[2], [1], [1], [2], [0, 0, 0, 1, 1, 2], [0], [0]>} : vector<2x8x8xf32>, vector<2x8x8xf32>, vector<2x8x8xf32> -> vector<2x8x8xf32>
    "tpu.trace_stop"() : () -> ()
    %69 = tpu.reciprocal %67 : vector<2x8x1xf32> -> vector<2x8x1xf32>
    %70 = vector.broadcast %69 : vector<2x8x1xf32> to vector<2x8x8xf32>
    %71 = arith.mulf %68, %70 : vector<2x8x8xf32>
    %72 = tpu.concatenate %26, %41, %56, %71 in 2 : vector<2x8x8xf32>, vector<2x8x8xf32>, vector<2x8x8xf32>, vector<2x8x8xf32> -> vector<2x8x32xf32>
    %73 = vector.shape_cast %72 : vector<2x8x32xf32> to vector<16x32xf32>
    %c0_21 = arith.constant 0 : index
    %c0_22 = arith.constant 0 : index
    %74 = vector.load %arg3[%c0_21, %c0_22] : memref<32x32xf32, #tpu.memory_space<vmem>>, vector<32x32xf32>
    %cst_23 = arith.constant dense<0.000000e+00> : vector<16x32xf32>
    %75 = tpu.matmul %73, %74, %cst_23 {dimension_numbers = #tpu.dot_dimension_numbers<[1], [0], [0], [1], [0, 0, 1, 1], [], []>} : vector<16x32xf32>, vector<32x32xf32>, vector<16x32xf32> -> vector<16x32xf32>
    %c0_24 = arith.constant 0 : index
    %c0_25 = arith.constant 0 : index
    %76 = vector.load %arg4[%c0_24, %c0_25] : memref<1x32xf32, #tpu.memory_space<vmem>>, vector<1x32xf32>
    %77 = vector.broadcast %76 : vector<1x32xf32> to vector<16x32xf32>
    %78 = arith.addf %75, %77 : vector<16x32xf32>
    %79 = arith.addf %0, %78 : vector<16x32xf32>
    %cst_26 = arith.constant dense<0.000000e+00> : vector<16xf32>
    %80 = vector.multi_reduction <add>, %79, %cst_26 [1] : vector<16x32xf32> to vector<16xf32>
    %81 = vector.shape_cast %80 : vector<16xf32> to vector<16x1xf32>
    %cst_27 = arith.constant 3.200000e+01 : f32
    %82 = vector.broadcast %cst_27 : f32 to vector<16x1xf32>
    %83 = arith.divf %81, %82 : vector<16x1xf32>
    %84 = vector.broadcast %83 : vector<16x1xf32> to vector<16x32xf32>
    %85 = arith.subf %79, %84 : vector<16x32xf32>
    %86 = arith.mulf %85, %85 : vector<16x32xf32>
    %cst_28 = arith.constant dense<0.000000e+00> : vector<16xf32>
    %87 = vector.multi_reduction <add>, %86, %cst_28 [1] : vector<16x32xf32> to vector<16xf32>
    %88 = vector.shape_cast %87 : vector<16xf32> to vector<16x1xf32>
    %cst_29 = arith.constant 3.200000e+01 : f32
    %89 = vector.broadcast %cst_29 : f32 to vector<16x1xf32>
    %90 = arith.divf %88, %89 : vector<16x1xf32>
    %91 = vector.broadcast %83 : vector<16x1xf32> to vector<16x32xf32>
    %92 = arith.subf %79, %91 : vector<16x32xf32>
    %cst_30 = arith.constant 9.99999974E-6 : f32
    %93 = vector.broadcast %cst_30 : f32 to vector<16x1xf32>
    %94 = arith.addf %90, %93 : vector<16x1xf32>
    %95 = math.rsqrt %94 : vector<16x1xf32>
    %96 = vector.broadcast %95 : vector<16x1xf32> to vector<16x32xf32>
    %97 = arith.mulf %92, %96 : vector<16x32xf32>
    %c0_31 = arith.constant 0 : index
    %c0_32 = arith.constant 0 : index
    %98 = vector.load %arg5[%c0_31, %c0_32] : memref<1x32xf32, #tpu.memory_space<vmem>>, vector<1x32xf32>
    %99 = vector.broadcast %98 : vector<1x32xf32> to vector<16x32xf32>
    %100 = arith.mulf %97, %99 : vector<16x32xf32>
    %c0_33 = arith.constant 0 : index
    %c0_34 = arith.constant 0 : index
    %101 = vector.load %arg6[%c0_33, %c0_34] : memref<1x32xf32, #tpu.memory_space<vmem>>, vector<1x32xf32>
    %102 = vector.broadcast %101 : vector<1x32xf32> to vector<16x32xf32>
    %103 = arith.addf %100, %102 : vector<16x32xf32>
    %c0_35 = arith.constant 0 : index
    %c0_36 = arith.constant 0 : index
    %104 = vector.load %arg7[%c0_35, %c0_36] : memref<32x128xf32, #tpu.memory_space<vmem>>, vector<32x128xf32>
    %cst_37 = arith.constant dense<0.000000e+00> : vector<16x128xf32>
    %105 = tpu.matmul %103, %104, %cst_37 {dimension_numbers = #tpu.dot_dimension_numbers<[1], [0], [0], [1], [0, 0, 1, 1], [], []>} : vector<16x32xf32>, vector<32x128xf32>, vector<16x128xf32> -> vector<16x128xf32>
    %c0_38 = arith.constant 0 : index
    %c0_39 = arith.constant 0 : index
    %106 = vector.load %arg8[%c0_38, %c0_39] : memref<1x128xf32, #tpu.memory_space<vmem>>, vector<1x128xf32>
    %107 = vector.broadcast %106 : vector<1x128xf32> to vector<16x128xf32>
    %108 = arith.addf %105, %107 : vector<16x128xf32>
    %cst_40 = arith.constant 0.000000e+00 : f32
    %109 = vector.broadcast %cst_40 : f32 to vector<16x128xf32>
    %110 = arith.maximumf %108, %109 : vector<16x128xf32>
    %c0_41 = arith.constant 0 : index
    %c0_42 = arith.constant 0 : index
    %111 = vector.load %arg9[%c0_41, %c0_42] : memref<128x32xf32, #tpu.memory_space<vmem>>, vector<128x32xf32>
    %cst_43 = arith.constant dense<0.000000e+00> : vector<16x32xf32>
    %112 = tpu.matmul %110, %111, %cst_43 {dimension_numbers = #tpu.dot_dimension_numbers<[1], [0], [0], [1], [0, 0, 1, 1], [], []>} : vector<16x128xf32>, vector<128x32xf32>, vector<16x32xf32> -> vector<16x32xf32>
    %c0_44 = arith.constant 0 : index
    %c0_45 = arith.constant 0 : index
    %113 = vector.load %arg10[%c0_44, %c0_45] : memref<1x32xf32, #tpu.memory_space<vmem>>, vector<1x32xf32>
    %114 = vector.broadcast %113 : vector<1x32xf32> to vector<16x32xf32>
    %115 = arith.addf %112, %114 : vector<16x32xf32>
    %116 = arith.addf %103, %115 : vector<16x32xf32>
    %cst_46 = arith.constant dense<0.000000e+00> : vector<16xf32>
    %117 = vector.multi_reduction <add>, %116, %cst_46 [1] : vector<16x32xf32> to vector<16xf32>
    %118 = vector.shape_cast %117 : vector<16xf32> to vector<16x1xf32>
    %cst_47 = arith.constant 3.200000e+01 : f32
    %119 = vector.broadcast %cst_47 : f32 to vector<16x1xf32>
    %120 = arith.divf %118, %119 : vector<16x1xf32>
    %121 = vector.broadcast %120 : vector<16x1xf32> to vector<16x32xf32>
    %122 = arith.subf %116, %121 : vector<16x32xf32>
    %123 = arith.mulf %122, %122 : vector<16x32xf32>
    %cst_48 = arith.constant dense<0.000000e+00> : vector<16xf32>
    %124 = vector.multi_reduction <add>, %123, %cst_48 [1] : vector<16x32xf32> to vector<16xf32>
    %125 = vector.shape_cast %124 : vector<16xf32> to vector<16x1xf32>
    %cst_49 = arith.constant 3.200000e+01 : f32
    %126 = vector.broadcast %cst_49 : f32 to vector<16x1xf32>
    %127 = arith.divf %125, %126 : vector<16x1xf32>
    %128 = vector.broadcast %120 : vector<16x1xf32> to vector<16x32xf32>
    %129 = arith.subf %116, %128 : vector<16x32xf32>
    %cst_50 = arith.constant 9.99999974E-6 : f32
    %130 = vector.broadcast %cst_50 : f32 to vector<16x1xf32>
    %131 = arith.addf %127, %130 : vector<16x1xf32>
    %132 = math.rsqrt %131 : vector<16x1xf32>
    %133 = vector.broadcast %132 : vector<16x1xf32> to vector<16x32xf32>
    %134 = arith.mulf %129, %133 : vector<16x32xf32>
    %c0_51 = arith.constant 0 : index
    %c0_52 = arith.constant 0 : index
    %135 = vector.load %arg11[%c0_51, %c0_52] : memref<1x32xf32, #tpu.memory_space<vmem>>, vector<1x32xf32>
    %136 = vector.broadcast %135 : vector<1x32xf32> to vector<16x32xf32>
    %137 = arith.mulf %134, %136 : vector<16x32xf32>
    %c0_53 = arith.constant 0 : index
    %c0_54 = arith.constant 0 : index
    %138 = vector.load %arg12[%c0_53, %c0_54] : memref<1x32xf32, #tpu.memory_space<vmem>>, vector<1x32xf32>
    %139 = vector.broadcast %138 : vector<1x32xf32> to vector<16x32xf32>
    %140 = arith.addf %137, %139 : vector<16x32xf32>
    %c0_55 = arith.constant 0 : index
    %c0_56 = arith.constant 0 : index
    %141 = vector.load %arg13[%c0_55, %c0_56] : memref<16x32xf32, #tpu.memory_space<vmem>>, vector<16x32xf32>
    tpu.vector_store %arg13[%c0_55, %c0_56], %140 {strides = array<i32>} : memref<16x32xf32, #tpu.memory_space<vmem>>, vector<16x32xf32>,
    return
  }
}

</mosaic_0001>

<bundles_post_ra>
// kernel: tpu_custom_call.1
= control target key start
LH: loop header
LB: loop body
LE: loop exit
PB: predicated region body
PF: predicated region fallthrough
CT: control target
= control target key end

     0   :  { %vm58_vm0 = vcmask 261120   ;;  %s2684_s0 = inlined_call_operand.vmem [shape: f32[16,32], index: 0, kind: input, shape index: {}]   ;;  %s2685_s1 = inlined_call_operand.vmem [shape: f32[32,96], index: 1, kind: input, shape index: {}]   ;;  %s2686_s2 = inlined_call_operand.vmem [shape: f32[1,96], index: 2, kind: input, shape index: {}]   ;;  %s2687_s3 = inlined_call_operand.vmem [shape: f32[32,32], index: 3, kind: input, shape index: {}]   ;;  %s2688_s4 = inlined_call_operand.vmem [shape: f32[1,32], index: 4, kind: input, shape index: {}]   ;;  %s2689_s5 = inlined_call_operand.vmem [shape: f32[1,32], index: 5, kind: input, shape index: {}]   ;;  %s2690_s6 = inlined_call_operand.vmem [shape: f32[1,32], index: 6, kind: input, shape index: {}]   ;;  %s2691_s7 = inlined_call_operand.vmem [shape: f32[32,128], index: 7, kind: input, shape index: {}]   ;;  %s2692_s8 = inlined_call_operand.vmem [shape: f32[1,128], index: 8, kind: input, shape index: {}]   ;;  %s2693_s9 = inlined_call_operand.vmem [shape: f32[128,32], index: 9, kind: input, shape index: {}]   ;;  %s2694_s10 = inlined_call_operand.vmem [shape: f32[1,32], index: 10, kind: input, shape index: {}]   ;;  %s2695_s11 = inlined_call_operand.vmem [shape: f32[1,32], index: 11, kind: input, shape index: {}]   ;;  %s2696_s12 = inlined_call_operand.vmem [shape: f32[1,32], index: 12, kind: input, shape index: {}]   ;;  %s2697_s13 = inlined_call_operand.hbm [shape: f32[16,32], index: 13, kind: output, shape index: {}]  }
   0x1   :  { %v47_v0 = vld [vmem:[%s2685_s1] sm:$0xff]  ;;  %v48_v1 = vld [vmem:[%s2685_s1 + $0x8] sm:$0xff]  ;;  %v49_v2 = vld [vmem:[%s2685_s1 + $0x10] sm:$0xff] }
   0x2   :  { %v2140_v3 = vpack.c.bf16 %v48_v1, %v47_v0  ;;  %v50_v4 = vld [vmem:[%s2685_s1 + $0x18] sm:$0xff]  ;;  %v2381_v5 = vld [vmem:[%s2684_s0] sm:$0xff] }
   0x3   :  { %v2144_v6 = vpack.c.bf16 %v50_v4, %v49_v2  ;;  %2000 = vmatprep.mubr.msk.f32.mxu1 %vm58_vm0, %v2381_v5 }
   0x4   :  { %18 = vsyncpa [#allocation3], 0  ;;  %2141 = vmatprep.subr.bf16.mxu1 %v2140_v3  ;;  %v2388_v7 = vld [vmem:[%s2684_s0 + $0x8] sm:$0xff]  ;;  %v2278_v8 = vmov 0.0   ;;  %vm2279_vm1 = vmmov 0   ;;  %s2280_s0 = smov 96  }
   0x5   :  { %2143 = vmatpush3.bf16.msra.mxu1 %v2140_v3  ;;  %2013 = vmatprep.subr.mxu0 %v2278_v8  ;;  %v1886_v9 = vld [vmem:[%s2686_s2] ss:$0 sm:$0xff]  ;;  %s2281_s21 = smov 64   ;;  %s2282_s22 = smov 88   ;;  %vm143_vm2 = vcmask 64512   ;;  %vm1488_vm3 = vcmask 195584  }
   0x6   :  { %2145 = vmatprep.subr.bf16.mxu1 %v2144_v6  ;;  %2015 = vmatprep.mubr.msk.f32.mxu0 %vm2279_vm1, %v2278_v8  ;;  %s2283_s2 = smov 120   ;;  %s2284_s23 = smov 56   ;;  %vm1485_vm4 = vcmask 130048  }
   0x7   :  { %s2285_s24 = smov 80   ;;  %s2286_s25 = smov 112  }
   0x8   :  { %s2287_s26 = smov 48   ;;  %s2288_s27 = smov 72  }
   0x9   :  { %2147 = vmatpush3.bf16.msra.mxu1 %v2144_v6  ;;  %s2289_s28 = smov 104   ;;  %s2290_s29 = smov 40  }
   0xa   :  { %2003 = vmatprep.subr.mxu1 %v2278_v8  ;;  %s2291_s30 = smov 8   ;;  %s2292_s14 = smov 16  }
   0xc   :  { %2001 = vmatmul.mubr.msk.f32.vlgmr.msra.gmra.mrb[0].mxu1 %vm58_vm0, %v2388_v7 }
   0xd   :  { %2005 = vmatprep.mubr.msk.f32.mxu1 %vm2279_vm1, %v2278_v8 }
  0xdf   :  { %v2002_v10 = vpop.f32.mrb[0].mxu1 }
  0xe0   :  { %v131_v11 = vpop.f32.mrb[1].mxu1  ;;  %v2404_v13 = vadd.f32 %v2002_v10, %v1886_v9 }
  0xe1   :  { %v2401_v12 = vadd.f32 %v1886_v9, %v131_v11 }
  0xe3   :  { %141 = vrot.lane.b32.xlu0 %v2401_v12, %s2280_s0 }
  0xe7   :  { %219 = vrot.lane.b32.xlu0 %v2404_v13, %s2280_s0 }
  0xeb   :  { %313 = vrot.lane.b32.xlu0 %v2401_v12, %s2281_s21 }
  0xef   :  { %471 = vrot.lane.b32.xlu0 %v2401_v12, %s2282_s22 }
  0xf3   :  { %549 = vrot.lane.b32.xlu0 %v2404_v13, %s2282_s22 }
  0xf7   :  { %469 = vrot.lane.b32.xlu0 %v2401_v12, %s2283_s2 }
  0xfb   :  { %547 = vrot.lane.b32.xlu0 %v2404_v13, %s2283_s2 }
  0xff   :  { %643 = vrot.lane.b32.xlu0 %v2401_v12, %s2284_s23 }
 0x155   :  { %v142_v14 = vpop.permute.xlu0 %141 }
 0x156   :  { %2004 = vmatpush3.xpose.msk.msra.mxu1 %vm143_vm2, %v142_v14 }
 0x157   :  { %2008 = vmatprep.subr.mxu1 %v2278_v8 }
 0x159   :  { %2006 = vmatmul.mubr.msk.f32.vlgmr.msra.gmra.mrb[2].mxu1 %vm143_vm2, %v2401_v12  ;;  %v220_v15 = vpop.permute.xlu0 %219 }
 0x15a   :  { %2009 = vmatpush3.xpose.msk.msra.mxu1 %vm143_vm2, %v220_v15  ;;  %2010 = vmatprep.mubr.msk.f32.mxu1 %vm2279_vm1, %v2278_v8 }
 0x15b   :  { %2018 = vmatprep.subr.mxu1 %v2278_v8 }
 0x15d   :  { %2011 = vmatmul.mubr.msk.f32.vlgmr.msra.gmra.mrb[4].mxu1 %vm143_vm2, %v2404_v13  ;;  %v314_v16 = vpop.permute.xlu0 %313 }
 0x15e   :  { %2014 = vmatpush3.msra.mxu0 %v314_v16  ;;  %2020 = vmatprep.mubr.msk.f32.mxu1 %vm2279_vm1, %v2278_v8 }
 0x15f   :  { %2023 = vmatprep.subr.mxu0 %v2278_v8 }
 0x161   :  { %v472_v23 = vpop.permute.xlu0 %471 }
 0x165   :  { %v550_v26 = vpop.permute.xlu0 %549 }
 0x169   :  { %v470_v31 = vpop.permute.xlu0 %469 }
 0x16d   :  { %v548_v33 = vpop.permute.xlu0 %547 }
 0x171   :  { %v644_v36 = vpop.permute.xlu0 %643 }
 0x22c   :  { %v214_v17 = vpop.f32.mrb[2].mxu1 }
 0x22d   :  { %v2007_v18 = vpop.f32.mrb[3].mxu1  ;;  %v295_v19 = vsel %vm143_vm2, %v214_v17, -inf }
 0x22e   :  { %296 = vmax.xlane.f32.xlu1 %v295_v19 }
 0x230   :  { %v291_v20 = vpop.f32.mrb[4].mxu1 }
 0x231   :  { %v2012_v21 = vpop.f32.mrb[5].mxu1  ;;  %v298_v22 = vsel %vm143_vm2, %v291_v20, -inf }
 0x232   :  { %299 = vmax.xlane.f32.xlu1 %v298_v22 }
 0x243   :  { %389 = vrot.lane.b32.xlu1 %v2404_v13, %s2281_s21  ;;  %s2293_s21 = smov 24  }
 0x247   :  { %719 = vrot.lane.b32.xlu1 %v2404_v13, %s2284_s23 }
 0x24b   :  { %801 = vrot.lane.b32.xlu1 %v2401_v12, %s2285_s24 }
 0x2bb   :  { %v297_v24 = vpop.xlane.xlu1 %296 }
 0x2bc   :  { %v301_v25 = vsub.f32 %v214_v17, %v297_v24 }
 0x2be   :  { %v303_v27 = vmul.f32 1.442695, %v301_v25 }
 0x2bf   :  { %v300_v28 = vpop.xlane.xlu1 %299 }
 0x2c0   :  { %2214 = vpow2.f32 %v303_v27  ;;  %v302_v29 = vsub.f32 %v291_v20, %v300_v28 }
 0x2c2   :  { %v305_v30 = vmul.f32 1.442695, %v302_v29 }
 0x2c3   :  { %v390_v32 = vpop.permute.xlu1 %389 }
 0x2c4   :  { %2216 = vpow2.f32 %v305_v30  ;;  %2019 = vmatpush3.msra.mxu1 %v390_v32 }
 0x2c5   :  { %2028 = vmatprep.subr.mxu1 %v2278_v8 }
 0x2c7   :  { %v720_v37 = vpop.permute.xlu1 %719 }
 0x2ca   :  { %v2435_v34 = vpop.eup %2214 }
 0x2cb   :  { %2016 = vmatmul.mubr.msk.f32.vlgmr.msra.gmra.mrb[0].mxu0 %vm143_vm2, %v2435_v34  ;;  %v802_v48 = vpop.permute.xlu1 %801 }
 0x2cc   :  { %2024 = vmatpush3.xpose.msk.msra.mxu0 %vm143_vm2, %v472_v23  ;;  %2025 = vmatprep.mubr.msk.f32.mxu0 %vm2279_vm1, %v2278_v8 }
 0x2cd   :  { %2033 = vmatprep.subr.mxu0 %v2278_v8 }
 0x2ce   :  { %v2443_v35 = vpop.eup %2216 }
 0x2cf   :  { %2021 = vmatmul.mubr.msk.f32.vlgmr.msra.gmra.mrb[6].mxu1 %vm143_vm2, %v2443_v35  ;;  %2026 = vmatmul.mubr.msk.f32.vlgmr.msra.gmra.mrb[2].mxu0 %vm143_vm2, %v470_v31 }
 0x2d0   :  { %2029 = vmatpush3.xpose.msk.msra.mxu1 %vm143_vm2, %v550_v26  ;;  %2034 = vmatpush3.msra.mxu0 %v644_v36 }
 0x2d1   :  { %2030 = vmatprep.mubr.msk.f32.mxu1 %vm2279_vm1, %v2278_v8  ;;  %2038 = vmatprep.subr.mxu1 %v2278_v8 }
 0x2d2   :  { %2035 = vmatprep.mubr.msk.f32.mxu0 %vm2279_vm1, %v2278_v8  ;;  %2043 = vmatprep.subr.mxu0 %v2278_v8 }
 0x2d3   :  { %2031 = vmatmul.mubr.msk.f32.vlgmr.msra.gmra.mrb[8].mxu1 %vm143_vm2, %v548_v33 }
 0x2d4   :  { %2039 = vmatpush3.msra.mxu1 %v720_v37  ;;  %2040 = vmatprep.mubr.msk.f32.mxu1 %vm2279_vm1, %v2278_v8 }
 0x2d5   :  { %2048 = vmatprep.subr.mxu1 %v2278_v8 }
 0x39e   :  { %v2459_v38 = vpop.f32.mrb[0].mxu0 }
 0x39f   :  { %v2017_v39 = vpop.f32.mrb[1].mxu0 }
 0x3a2   :  { %v2461_v40 = vpop.f32.mrb[6].mxu1  ;;  %v543_v41 = vpop.f32.mrb[2].mxu0 }
 0x3a3   :  { %v2022_v42 = vpop.f32.mrb[7].mxu1  ;;  %v2027_v43 = vpop.f32.mrb[3].mxu0  ;;  %v625_v44 = vsel %vm143_vm2, %v543_v41, -inf }
 0x3a4   :  { %626 = vmax.xlane.f32.xlu1 %v625_v44 }
 0x3a6   :  { %v621_v45 = vpop.f32.mrb[8].mxu1 }
 0x3a7   :  { %v2032_v46 = vpop.f32.mrb[9].mxu1  ;;  %v628_v47 = vsel %vm143_vm2, %v621_v45, -inf }
 0x3a8   :  { %629 = vmax.xlane.f32.xlu0 %v628_v47 }
 0x3b5   :  { %799 = vrot.lane.b32.xlu1 %v2401_v12, %s2286_s25 }
 0x3b9   :  { %1049 = vrot.lane.b32.xlu1 %v2404_v13, %s2287_s26 }
 0x3bd   :  { %1131 = vrot.lane.b32.xlu1 %v2401_v12, %s2288_s27 }
 0x3be   :  { %879 = vrot.lane.b32.xlu0 %v2404_v13, %s2285_s24  ;;  %s2294_s24 = smov [#allocation2]  }
 0x3c2   :  { %877 = vrot.lane.b32.xlu0 %v2404_v13, %s2286_s25  ;;  %s1875_s25 = sshll.u32 %s2294_s24, 4  ;;  %s1876_s25 = int_to_ptr.vmem [resolvable:$true] %s1875_s25 }
 0x3c3   :  { %p2259_p1 = scmp.lt.s32.totalorder %s1876_s25, %s1876_s25 }
 0x3c6   :  { %973 = vrot.lane.b32.xlu0 %v2401_v12, %s2287_s26  ;;  %s2254_s26 = scalar_lea.vmem %s1876_s25, 256 }
 0x3c7   :  { %p2255_p0 = scmp.ne.s32.totalorder %s1876_s25, %s2254_s26  ;;  %p2260_p2 = scmp.lt.s32.totalorder %s2254_s26, %s2254_s26 }
 0x3c9   :  { %p2261_p3 = por %p2260_p2, %p2259_p1 }
 0x3cb   :  { %p2262_p4 = pnand %p2261_p3, %p2255_p0 }
 0x431   :  { %v627_v49 = vpop.xlane.xlu1 %626 }
 0x432   :  { %v631_v50 = vsub.f32 %v543_v41, %v627_v49 }
 0x434   :  { %v633_v51 = vmul.f32 1.442695, %v631_v50 }
 0x435   :  { %v630_v52 = vpop.xlane.xlu0 %629  ;;  %v800_v58 = vpop.permute.xlu1 %799 }
 0x436   :  { %2218 = vpow2.f32 %v633_v51  ;;  %v632_v53 = vsub.f32 %v621_v45, %v630_v52  ;;  %v307_v51 = vsel %vm143_vm2, %v2435_v34, 0.0 }
 0x438   :  { %v635_v54 = vmul.f32 1.442695, %v632_v53  ;;  %v310_v53 = vsel %vm143_vm2, %v2443_v35, 0.0 }
 0x439   :  { %v880_v55 = vpop.permute.xlu0 %879  ;;  %v1050_v61 = vpop.permute.xlu1 %1049 }
 0x43a   :  { %2220 = vpow2.f32 %v635_v54 }
 0x43d   :  { %v878_v56 = vpop.permute.xlu0 %877  ;;  %v1132_v11 = vpop.permute.xlu1 %1131 }
 0x440   :  { %v2473_v57 = vpop.eup %2218 }
 0x441   :  { %2036 = vmatmul.mubr.msk.f32.vlgmr.msra.gmra.mrb[4].mxu0 %vm143_vm2, %v2473_v57  ;;  %v974_v60 = vpop.permute.xlu0 %973 }
 0x442   :  { %2044 = vmatpush3.xpose.msk.msra.mxu0 %vm143_vm2, %v802_v48  ;;  %2045 = vmatprep.mubr.msk.f32.mxu0 %vm2279_vm1, %v2278_v8 }
 0x443   :  { %2053 = vmatprep.subr.mxu0 %v2278_v8 }
 0x444   :  { %v2481_v59 = vpop.eup %2220 }
 0x445   :  { %2041 = vmatmul.mubr.msk.f32.vlgmr.msra.gmra.mrb[10].mxu1 %vm143_vm2, %v2481_v59  ;;  %2046 = vmatmul.mubr.msk.f32.vlgmr.msra.gmra.mrb[6].mxu0 %vm143_vm2, %v800_v58  ;;  %v640_v39 = vsel %vm143_vm2, %v2481_v59, 0.0 }
 0x446   :  { %2049 = vmatpush3.xpose.msk.msra.mxu1 %vm143_vm2, %v880_v55  ;;  %2054 = vmatpush3.msra.mxu0 %v974_v60 }
 0x447   :  { %2050 = vmatprep.mubr.msk.f32.mxu1 %vm2279_vm1, %v2278_v8  ;;  %2058 = vmatprep.subr.mxu1 %v2278_v8 }
 0x448   :  { %2055 = vmatprep.mubr.msk.f32.mxu0 %vm2279_vm1, %v2278_v8  ;;  %2063 = vmatprep.subr.mxu0 %v2278_v8 }
 0x449   :  { %2051 = vmatmul.mubr.msk.f32.vlgmr.msra.gmra.mrb[12].mxu1 %vm143_vm2, %v878_v56 }
 0x44a   :  { %2059 = vmatpush3.msra.mxu1 %v1050_v61  ;;  %2060 = vmatprep.mubr.msk.f32.mxu1 %vm2279_vm1, %v2278_v8 }
 0x44b   :  { %2068 = vmatprep.subr.mxu1 %v2278_v8 }
 0x514   :  { %v2497_v62 = vpop.f32.mrb[4].mxu0 }
 0x515   :  { %v2037_v63 = vpop.f32.mrb[5].mxu0 }
 0x518   :  { %v2499_v0 = vpop.f32.mrb[10].mxu1  ;;  %v873_v1 = vpop.f32.mrb[6].mxu0 }
 0x519   :  { %v2042_v2 = vpop.f32.mrb[11].mxu1  ;;  %v2047_v3 = vpop.f32.mrb[7].mxu0  ;;  %v955_v4 = vsel %vm143_vm2, %v873_v1, -inf }
 0x51a   :  { %956 = vmax.xlane.f32.xlu1 %v955_v4  ;;  %v1492_v2 = vld [vmem:[%s2687_s3 + $0x8] sm:$0xff]  ;;  %v1493_v4 = vld [vmem:[%s2687_s3 + $0x10] sm:$0xff] }
 0x51c   :  { %v951_v6 = vpop.f32.mrb[12].mxu1 }
 0x51d   :  { %v2052_v9 = vpop.f32.mrb[13].mxu1  ;;  %v958_v10 = vsel %vm143_vm2, %v951_v6, -inf }
 0x51e   :  { %959 = vmax.xlane.f32.xlu0 %v958_v10 }
 0x52b   :  { %1129 = vrot.lane.b32.xlu1 %v2401_v12, %s2289_s28 }
 0x534   :  { %1209 = vrot.lane.b32.xlu0 %v2404_v13, %s2288_s27 }
 0x538   :  { %1207 = vrot.lane.b32.xlu0 %v2404_v13, %s2289_s28 }
 0x5a7   :  { %v957_v14 = vpop.xlane.xlu1 %956 }
 0x5a8   :  { %v961_v15 = vsub.f32 %v873_v1, %v957_v14 }
 0x5aa   :  { %v963_v16 = vmul.f32 1.442695, %v961_v15 }
 0x5ab   :  { %v960_v17 = vpop.xlane.xlu0 %959  ;;  %v1130_v23 = vpop.permute.xlu1 %1129 }
 0x5ac   :  { %2222 = vpow2.f32 %v963_v16  ;;  %v962_v18 = vsub.f32 %v951_v6, %v960_v17  ;;  %v1494_v6 = vld [vmem:[%s2687_s3 + $0x18] sm:$0xff] }
 0x5ad   :  { %v2152_v9 = vpack.c.bf16 %v1494_v6, %v1493_v4  ;;  %v1730_v4 = vld [vmem:[%s2693_s9 + $0x30] sm:$0xff]  ;;  %v1731_v6 = vld [vmem:[%s2693_s9 + $0x38] sm:$0xff] }
 0x5ae   :  { %v965_v19 = vmul.f32 1.442695, %v962_v18 }
 0x5af   :  { %v1210_v21 = vpop.permute.xlu0 %1209 }
 0x5b0   :  { %2224 = vpow2.f32 %v965_v19 }
 0x5b3   :  { %v1208_v24 = vpop.permute.xlu0 %1207 }
 0x5b6   :  { %v2223_v20 = vpop.eup %2222 }
 0x5b7   :  { %2056 = vmatmul.mubr.msk.f32.vlgmr.msra.gmra.mrb[8].mxu0 %vm143_vm2, %v2223_v20  ;;  %v967_v41 = vsel %vm143_vm2, %v2223_v20, 0.0 }
 0x5b8   :  { %2064 = vmatpush3.xpose.msk.msra.mxu0 %vm143_vm2, %v1132_v11  ;;  %2065 = vmatprep.mubr.msk.f32.mxu0 %vm2279_vm1, %v2278_v8 }
 0x5b9   :  { %2073 = vmatprep.subr.mxu0 %v2278_v8 }
 0x5ba   :  { %v2225_v22 = vpop.eup %2224 }
 0x5bb   :  { %2061 = vmatmul.mubr.msk.f32.vlgmr.msra.gmra.mrb[14].mxu1 %vm143_vm2, %v2225_v22  ;;  %2066 = vmatmul.mubr.msk.f32.vlgmr.msra.gmra.mrb[10].mxu0 %vm143_vm2, %v1130_v23  ;;  %v970_v37 = vsel %vm143_vm2, %v2225_v22, 0.0 }
 0x5bc   :  { %2069 = vmatpush3.xpose.msk.msra.mxu1 %vm143_vm2, %v1210_v21  ;;  %2070 = vmatprep.mubr.msk.f32.mxu1 %vm2279_vm1, %v2278_v8 }
 0x5bd   :  { %2078 = vmatprep.subr.mxu1 %v2278_v8  ;;  %2075 = vmatprep.mubr.msk.f32.mxu0 %vm2279_vm1, %v2278_v8 }
 0x5bf   :  { %2071 = vmatmul.mubr.msk.f32.vlgmr.msra.gmra.mrb[16].mxu1 %vm143_vm2, %v1208_v24 }
 0x5c0   :  { %2080 = vmatprep.mubr.msk.f32.mxu1 %vm2279_vm1, %v2278_v8  ;;  %v637_v8 = vsel %vm143_vm2, %v2473_v57, 0.0 }
 0x68a   :  { %v2523_v25 = vpop.f32.mrb[8].mxu0 }
 0x68b   :  { %v2057_v26 = vpop.f32.mrb[9].mxu0 }
 0x68e   :  { %v1121_v27 = vpop.f32.mrb[14].mxu1  ;;  %v1203_v28 = vpop.f32.mrb[10].mxu0 }
 0x68f   :  { %v2062_v29 = vpop.f32.mrb[15].mxu1  ;;  %v2067_v30 = vpop.f32.mrb[11].mxu0  ;;  %v1285_v31 = vsel %vm143_vm2, %v1203_v28, -inf }
 0x690   :  { %1286 = vmax.xlane.f32.xlu1 %v1285_v31 }
 0x692   :  { %v1281_v32 = vpop.f32.mrb[16].mxu1 }
 0x693   :  { %v2072_v33 = vpop.f32.mrb[17].mxu1  ;;  %v1288_v36 = vsel %vm143_vm2, %v1281_v32, -inf }
 0x694   :  { %1289 = vmax.xlane.f32.xlu0 %v1288_v36 }
 0x6a1   :  { %1379 = vrot.lane.b32.xlu1 %v2404_v13, %s2290_s29 }
 0x6aa   :  { %1303 = vrot.lane.b32.xlu0 %v2401_v12, %s2290_s29 }
 0x6c5   :  { %638 = vadd.xlane.f32.xlu1 %v637_v8 }
 0x6c9   :  { %971 = vadd.xlane.f32.xlu1 %v970_v37  ;;  %641 = vadd.xlane.f32.xlu0 %v640_v39 }
 0x6cd   :  { %968 = vadd.xlane.f32.xlu0 %v967_v41 }
 0x71d   :  { %v1287_v42 = vpop.xlane.xlu1 %1286 }
 0x71e   :  { %v1291_v43 = vsub.f32 %v1203_v28, %v1287_v42 }
 0x720   :  { %v1293_v44 = vmul.f32 1.442695, %v1291_v43 }
 0x721   :  { %v1380_v13 = vpop.permute.xlu1 %1379  ;;  %v1290_v45 = vpop.xlane.xlu0 %1289 }
 0x722   :  { %2226 = vpow2.f32 %v1293_v44  ;;  %v1292_v12 = vsub.f32 %v1281_v32, %v1290_v45  ;;  %2079 = vmatpush3.msra.mxu1 %v1380_v13 }
 0x724   :  { %v1295_v46 = vmul.f32 1.442695, %v1292_v12 }
 0x725   :  { %v1304_v47 = vpop.permute.xlu0 %1303 }
 0x726   :  { %2228 = vpow2.f32 %v1295_v46  ;;  %2074 = vmatpush3.msra.mxu0 %v1304_v47 }
 0x72c   :  { %v2227_v48 = vpop.eup %2226 }
 0x72d   :  { %2076 = vmatmul.mubr.msk.f32.vlgmr.msra.gmra.mrb[12].mxu0 %vm143_vm2, %v2227_v48  ;;  %v1297_v49 = vsel %vm143_vm2, %v2227_v48, 0.0 }
 0x72e   :  { %1298 = vadd.xlane.f32.xlu0 %v1297_v49 }
 0x730   :  { %v2229_v50 = vpop.eup %2228 }
 0x731   :  { %2081 = vmatmul.mubr.msk.f32.vlgmr.msra.gmra.mrb[18].mxu1 %vm143_vm2, %v2229_v50  ;;  %v1300_v52 = vsel %vm143_vm2, %v2229_v50, 0.0 }
 0x732   :  { %308 = vadd.xlane.f32.xlu0 %v307_v51  ;;  %1301 = vadd.xlane.f32.xlu1 %v1300_v52 }
 0x736   :  { %311 = vadd.xlane.f32.xlu1 %v310_v53 }
 0x752   :  { %v639_v54 = vpop.xlane.xlu1 %638 }
 0x753   :  { %2230 = vrcp.f32 %v639_v54 }
 0x756   :  { %v972_v55 = vpop.xlane.xlu1 %971  ;;  %v642_v56 = vpop.xlane.xlu0 %641 }
 0x757   :  { %2232 = vrcp.f32 %v972_v55  ;;  %v1630_v55 = vld [vmem:[%s2691_s7] sm:$0xff] }
 0x758   :  { %2234 = vrcp.f32 %v642_v56  ;;  %v1631_v56 = vld [vmem:[%s2691_s7 + $0x8] sm:$0xff] }
 0x75a   :  { %v969_v57 = vpop.xlane.xlu0 %968 }
 0x75b   :  { %2236 = vrcp.f32 %v969_v57  ;;  %v2156_v57 = vpack.c.bf16 %v1631_v56, %v1630_v55 }
 0x75d   :  { %v2231_v58 = vpop.eup %2230 }
 0x75e   :  { %v797_v59 = vmul.f32 %v2231_v58, %v2497_v62  ;;  %v1491_v62 = vld [vmem:[%s2687_s3] sm:$0xff]  ;;  %v1632_v58 = vld [vmem:[%s2691_s7 + $0x10] sm:$0xff] }
 0x75f   :  { %v2148_v3 = vpack.c.bf16 %v1492_v2, %v1491_v62  ;;  %v1728_v2 = vld [vmem:[%s2693_s9 + $0x20] sm:$0xff] }
 0x760   :  { %1461 = vrot.lane.b32.xlu0 %v797_v59, %s2291_s30  ;;  %v1633_v59 = vld [vmem:[%s2691_s7 + $0x18] sm:$0xff] }
 0x761   :  { %v2233_v34 = vpop.eup %2232  ;;  %2149 = vmatprep.subr.bf16.mxu1 %v2148_v3 }
 0x762   :  { %v2235_v60 = vpop.eup %2234  ;;  %v1128_v61 = vmul.f32 %v2233_v34, %v1121_v27  ;;  %2151 = vmatpush3.bf16.msra.mxu1 %v2148_v3  ;;  %v2160_v34 = vpack.c.bf16 %v1633_v59, %v1632_v58  ;;  %v1729_v3 = vld [vmem:[%s2693_s9 + $0x28] sm:$0xff] }
 0x763   :  { %v798_v35 = vmul.f32 %v2235_v60, %v2499_v0  ;;  %2153 = vmatprep.subr.bf16.mxu1 %v2152_v9  ;;  %v1724_v60 = vld [vmem:[%s2693_s9] sm:$0xff] }
 0x764   :  { %1471 = vrot.lane.b32.xlu0 %v1128_v61, %s2292_s14  ;;  %v1725_v61 = vld [vmem:[%s2693_s9 + $0x8] sm:$0xff] }
 0x765   :  { %v2237_v63 = vpop.eup %2236  ;;  %1463 = vrot.lane.b32.xlu1 %v798_v35, %s2291_s30  ;;  %v1726_v35 = vld [vmem:[%s2693_s9 + $0x10] sm:$0xff] }
 0x766   :  { %v1127_v1 = vmul.f32 %v2237_v63, %v2523_v25  ;;  %2155 = vmatpush3.bf16.msra.mxu1 %v2152_v9  ;;  %v2164_v63 = vpack.c.bf16 %v1725_v61, %v1724_v60  ;;  %v2176_v9 = vpack.c.bf16 %v1731_v6, %v1730_v4  ;;  %v1922_v4 = vld [vmem:[%s2695_s11] ss:$0 sm:$0xff] }
 0x767   :  { %2157 = vmatprep.subr.bf16.mxu1 %v2156_v57 }
 0x768   :  { %2165 = vmatprep.subr.bf16.mxu0 %v2164_v63 }
 0x769   :  { %1469 = vrot.lane.b32.xlu1 %v1127_v1, %s2292_s14  ;;  %v1727_v1 = vld [vmem:[%s2693_s9 + $0x18] sm:$0xff]  ;;  %2167 = vmatpush3.bf16.msra.mxu0 %v2164_v63 }
 0x76a   :  { %v2168_v62 = vpack.c.bf16 %v1727_v1, %v1726_v35 }
 0x76c   :  { %2169 = vmatprep.subr.bf16.mxu0 %v2168_v62 }
 0x76d   :  { %2171 = vmatpush3.bf16.msra.mxu0 %v2168_v62 }
 0x7bb   :  { %v1299_v0 = vpop.xlane.xlu0 %1298 }
 0x7bc   :  { %2238 = vrcp.f32 %v1299_v0  ;;  %v2172_v0 = vpack.c.bf16 %v1729_v3, %v1728_v2 }
 0x7be   :  { %2173 = vmatprep.subr.bf16.mxu0 %v2172_v0 }
 0x7bf   :  { %v1302_v10 = vpop.xlane.xlu1 %1301  ;;  %v309_v21 = vpop.xlane.xlu0 %308  ;;  %2175 = vmatpush3.bf16.msra.mxu0 %v2172_v0 }
 0x7c0   :  { %2240 = vrcp.f32 %v1302_v10  ;;  %v1732_v10 = vld [vmem:[%s2693_s9 + $0x40] sm:$0xff]  ;;  %2177 = vmatprep.subr.bf16.mxu0 %v2176_v9 }
 0x7c1   :  { %2242 = vrcp.f32 %v309_v21 }
 0x7c3   :  { %v312_v22 = vpop.xlane.xlu1 %311  ;;  %2179 = vmatpush3.bf16.msra.mxu0 %v2176_v9 }
 0x7c4   :  { %2244 = vrcp.f32 %v312_v22 }
 0x7c6   :  { %v2239_v11 = vpop.eup %2238 }
 0x7ca   :  { %v2241_v17 = vpop.eup %2240 }
 0x7cb   :  { %v2243_v24 = vpop.eup %2242 }
 0x7cc   :  { %v467_v28 = vmul.f32 %v2243_v24, %v2459_v38  ;;  %v1913_v38 = vld [vmem:[%s2688_s4] ss:$0 sm:$0xff] }
 0x7ce   :  { %v2245_v26 = vpop.eup %2244 }
 0x7cf   :  { %v468_v30 = vmul.f32 %v2245_v26, %v2461_v40 }
 0x7d2   :  { %v1462_v25 = vpop.permute.xlu0 %1461 }
 0x7d3   :  { %v1483_v29 = vsel %vm143_vm2, %v467_v28, %v1462_v25  ;;  %v1916_v28 = vld [vmem:[%s2689_s5] ss:$0 sm:$0xff] }
 0x7d6   :  { %v1472_v31 = vpop.permute.xlu0 %1471 }
 0x7d7   :  { %v1464_v23 = vpop.permute.xlu1 %1463 }
 0x7d8   :  { %v1484_v36 = vsel %vm143_vm2, %v468_v30, %v1464_v23 }
 0x7d9   :  { %v1487_v37 = vsel %vm1485_vm4, %v1484_v36, %v1472_v31 }
 0x7db   :  { %v1470_v27 = vpop.permute.xlu1 %1469 }
 0x7dc   :  { %v1486_v32 = vsel %vm1485_vm4, %v1483_v29, %v1470_v27 }
 0x800   :  { %v1375_v14 = vpop.f32.mrb[12].mxu0 }
 0x801   :  { %v1457_v15 = vmul.f32 %v2239_v11, %v1375_v14  ;;  %v2077_v16 = vpop.f32.mrb[13].mxu0  ;;  %v1733_v11 = vld [vmem:[%s2693_s9 + $0x48] sm:$0xff] }
 0x802   :  { %v2180_v14 = vpack.c.bf16 %v1733_v11, %v1732_v10  ;;  %v1735_v16 = vld [vmem:[%s2693_s9 + $0x58] sm:$0xff]  ;;  %v1923_v11 = vld [vmem:[%s2696_s12] ss:$0 sm:$0xff] }
 0x803   :  { %1477 = vrot.lane.b32.xlu1 %v1457_v15, %s2293_s21  ;;  %v1734_v15 = vld [vmem:[%s2693_s9 + $0x50] sm:$0xff] }
 0x804   :  { %v1451_v18 = vpop.f32.mrb[18].mxu1  ;;  %2181 = vmatprep.subr.bf16.mxu0 %v2180_v14 }
 0x805   :  { %v1458_v19 = vmul.f32 %v2241_v17, %v1451_v18  ;;  %v2082_v20 = vpop.f32.mrb[19].mxu1  ;;  %v2184_v17 = vpack.c.bf16 %v1735_v16, %v1734_v15  ;;  %v1736_v18 = vld [vmem:[%s2693_s9 + $0x60] sm:$0xff]  ;;  %2183 = vmatpush3.bf16.msra.mxu0 %v2180_v14 }
 0x807   :  { %1479 = vrot.lane.b32.xlu0 %v1458_v19, %s2293_s21  ;;  %v1737_v19 = vld [vmem:[%s2693_s9 + $0x68] sm:$0xff]  ;;  %2185 = vmatprep.subr.bf16.mxu0 %v2184_v17 }
 0x808   :  { %v2188_v20 = vpack.c.bf16 %v1737_v19, %v1736_v18 }
 0x809   :  { %2187 = vmatpush3.bf16.msra.mxu0 %v2184_v17 }
 0x80a   :  { %2189 = vmatprep.subr.bf16.mxu0 %v2188_v20 }
 0x80d   :  { %2191 = vmatpush3.bf16.msra.mxu0 %v2188_v20 }
 0x875   :  { %v1478_v33 = vpop.permute.xlu1 %1477 }
 0x876   :  { %v1489_v8 = vsel %vm1488_vm3, %v1486_v32, %v1478_v33  ;;  %v1917_v33 = vld [vmem:[%s2690_s6] ss:$0 sm:$0xff] }
 0x877   :  { %2091 = vmatprep.mubr.msk.f32.mxu1 %vm58_vm0, %v1489_v8 }
 0x879   :  { %v1480_v39 = vpop.permute.xlu0 %1479 }
 0x87a   :  { %v1490_v41 = vsel %vm1488_vm3, %v1487_v37, %v1480_v39  ;;  %v1738_v39 = vld [vmem:[%s2693_s9 + $0x70] sm:$0xff] }
 0x87b   :  { %2092 = vmatmul.mubr.msk.f32.vlgmr.msra.gmra.mrb[20].mxu1 %vm58_vm0, %v1490_v41  ;;  %v1739_v41 = vld [vmem:[%s2693_s9 + $0x78] sm:$0xff] }
 0x87c   :  { %2159 = vmatpush3.bf16.msra.mxu1 %v2156_v57 }
 0x87d   :  { %2161 = vmatprep.subr.bf16.mxu1 %v2160_v34 }
 0x880   :  { %2163 = vmatpush3.bf16.msra.mxu1 %v2160_v34 }
 0x94e   :  { %v2093_v42 = vpop.f32.mrb[20].mxu1 }
 0x94f   :  { %v1580_v40 = vadd.f32 %v2093_v42, %v1913_v38  ;;  %v1574_v43 = vpop.f32.mrb[21].mxu1  ;;  %v1918_v42 = vld [vmem:[%s2692_s8] ss:$0 sm:$0xff] }
 0x950   :  { %v1575_v44 = vadd.f32 %v1913_v38, %v1574_v43  ;;  %v2192_v38 = vpack.c.bf16 %v1739_v41, %v1738_v39 }
 0x951   :  { %v1584_v13 = vadd.f32 %v1580_v40, %v2388_v7 }
 0x952   :  { %v1583_v45 = vadd.f32 %v1575_v44, %v2381_v5  ;;  %2193 = vmatprep.subr.bf16.mxu0 %v2192_v38 }
 0x953   :  { %v1588_v12 = vsel %vm58_vm0, %v1584_v13, 0.0  ;;  %2195 = vmatpush3.bf16.msra.mxu0 %v2192_v38 }
 0x954   :  { %1589 = vadd.xlane.f32.xlu0 %v1588_v12  ;;  %v1585_v46 = vsel %vm58_vm0, %v1583_v45, 0.0 }
 0x955   :  { %1586 = vadd.xlane.f32.xlu1 %v1585_v46  ;;  %v1921_v46 = vld [vmem:[%s2694_s10] ss:$0 sm:$0xff] }
 0x9e1   :  { %v1590_v47 = vpop.xlane.xlu0 %1589 }
 0x9e2   :  { %v1593_v48 = vmul.f32 0.03125, %v1590_v47  ;;  %v1587_v49 = vpop.xlane.xlu1 %1586 }
 0x9e3   :  { %v1592_v50 = vmul.f32 0.03125, %v1587_v49 }
 0x9e4   :  { %v2573_v51 = vsub.f32 %v1584_v13, %v1593_v48 }
 0x9e5   :  { %v2575_v52 = vsub.f32 %v1583_v45, %v1592_v50 }
 0x9e6   :  { %v1597_v53 = vmul.f32 %v2573_v51, %v2573_v51 }
 0x9e7   :  { %v1596_v5 = vmul.f32 %v2575_v52, %v2575_v52 }
 0x9e8   :  { %v1601_v7 = vsel %vm58_vm0, %v1597_v53, 0.0 }
 0x9e9   :  { %1602 = vadd.xlane.f32.xlu1 %v1601_v7  ;;  %v1598_v54 = vsel %vm58_vm0, %v1596_v5, 0.0 }
 0x9ea   :  { %1599 = vadd.xlane.f32.xlu0 %v1598_v54 }
 0xa76   :  { %v1603_v21 = vpop.xlane.xlu1 %1602 }
 0xa77   :  { %v1605_v22 = vmul.f32 0.03125, %v1603_v21  ;;  %v1600_v23 = vpop.xlane.xlu0 %1599 }
 0xa78   :  { %v1604_v24 = vmul.f32 0.03125, %v1600_v23 }
 0xa79   :  { %v1607_v25 = vadd.f32 1e-05, %v1605_v22 }
 0xa7a   :  { %v1606_v26 = vadd.f32 1e-05, %v1604_v24 }
 0xa7b   :  { %2246 = vrsqrt.f32 %v1607_v25 }
 0xa7c   :  { %2248 = vrsqrt.f32 %v1606_v26 }
 0xa85   :  { %v2247_v27 = vpop.eup %2246 }
 0xa86   :  { %v2249_v29 = vpop.eup %2248  ;;  %v1611_v30 = vmul.f32 %v2247_v27, %v2573_v51 }
 0xa87   :  { %v1610_v31 = vmul.f32 %v2249_v29, %v2575_v52 }
 0xa88   :  { %v1620_v32 = vmul.f32 %v1916_v28, %v1611_v30 }
 0xa89   :  { %v1619_v36 = vmul.f32 %v1916_v28, %v1610_v31 }
 0xa8a   :  { %v1629_v37 = vadd.f32 %v1917_v33, %v1620_v32 }
 0xa8b   :  { %v1628_v8 = vadd.f32 %v1917_v33, %v1619_v36 }
 0xa8d   :  { %2102 = vmatprep.mubr.msk.f32.mxu1 %vm58_vm0, %v1628_v8 }
 0xa8e   :  { %2103 = vmatmul.mubr.msk.f32.vlgmr.msra.gmra.mrb[22].mxu1 %vm58_vm0, %v1629_v37 }
 0xb61   :  { %v2104_v40 = vpop.f32.mrb[22].mxu1 }
 0xb62   :  { %v1719_v43 = vadd.f32 %v2104_v40, %v1918_v42  ;;  %v1713_v44 = vpop.f32.mrb[23].mxu1 }
 0xb63   :  { %v1714_v13 = vadd.f32 %v1918_v42, %v1713_v44 }
 0xb64   :  { %v1723_v12 = vmax.f32 %v1719_v43, 0.0 }
 0xb65   :  { %v1722_v45 = vmax.f32 %v1714_v13, 0.0 }
 0xb67   :  { %2137 = vmatprep.mubr.f32.mxu0 %v1722_v45 }
 0xb68   :  { %2138 = vmatmul.mubr.f32.vlgmr.msra.gmra.mrb[14].mxu0 %v1723_v12 }
 0xc3b   :  { %v2139_v47 = vpop.f32.mrb[14].mxu0 }
 0xc3c   :  { %v1819_v48 = vadd.f32 %v2139_v47, %v1921_v46  ;;  %v1813_v49 = vpop.f32.mrb[15].mxu0 }
 0xc3d   :  { %v1814_v50 = vadd.f32 %v1921_v46, %v1813_v49 }
 0xc3e   :  { %v1823_v51 = vadd.f32 %v1819_v48, %v1629_v37 }
 0xc3f   :  { %v1822_v52 = vadd.f32 %v1814_v50, %v1628_v8 }
 0xc40   :  { %v1827_v53 = vsel %vm58_vm0, %v1823_v51, 0.0 }
 0xc41   :  { %1828 = vadd.xlane.f32.xlu1 %v1827_v53  ;;  %v1824_v5 = vsel %vm58_vm0, %v1822_v52, 0.0 }
 0xc42   :  { %1825 = vadd.xlane.f32.xlu0 %v1824_v5 }
 0xcce   :  { %v1829_v7 = vpop.xlane.xlu1 %1828 }
 0xccf   :  { %v1831_v54 = vmul.f32 0.03125, %v1829_v7  ;;  %v1826_v55 = vpop.xlane.xlu0 %1825 }
 0xcd0   :  { %v1830_v56 = vmul.f32 0.03125, %v1826_v55 }
 0xcd1   :  { %v1833_v57 = vsub.f32 %v1823_v51, %v1831_v54 }
 0xcd2   :  { %v1832_v58 = vsub.f32 %v1822_v52, %v1830_v56 }
 0xcd3   :  { %v1835_v59 = vmul.f32 %v1833_v57, %v1833_v57 }
 0xcd4   :  { %v1834_v34 = vmul.f32 %v1832_v58, %v1832_v58 }
 0xcd5   :  { %v1839_v60 = vsel %vm58_vm0, %v1835_v59, 0.0 }
 0xcd6   :  { %1840 = vadd.xlane.f32.xlu1 %v1839_v60  ;;  %v1836_v61 = vsel %vm58_vm0, %v1834_v34, 0.0 }
 0xcd7   :  { %1837 = vadd.xlane.f32.xlu0 %v1836_v61 }
 0xd63   :  { %v1841_v35 = vpop.xlane.xlu1 %1840 }
 0xd64   :  { %v1843_v63 = vmul.f32 0.03125, %v1841_v35  ;;  %v1838_v1 = vpop.xlane.xlu0 %1837 }
 0xd65   :  { %v1842_v62 = vmul.f32 0.03125, %v1838_v1 }
 0xd66   :  { %v1845_v2 = vadd.f32 1e-05, %v1843_v63 }
 0xd67   :  { %v1844_v3 = vadd.f32 1e-05, %v1842_v62 }
 0xd68   :  { %2250 = vrsqrt.f32 %v1845_v2 }
 0xd69   :  { %2252 = vrsqrt.f32 %v1844_v3 }
 0xd72   :  { %v2251_v0 = vpop.eup %2250 }
 0xd73   :  { %v2253_v6 = vpop.eup %2252  ;;  %v1849_v9 = vmul.f32 %v2251_v0, %v1833_v57 }
 0xd74   :  { %v1848_v10 = vmul.f32 %v2253_v6, %v1832_v58 }
 0xd75   :  { %v1858_v14 = vmul.f32 %v1922_v4, %v1849_v9 }
 0xd76   :  { %v1857_v15 = vmul.f32 %v1922_v4, %v1848_v10 }
 0xd77   :  { %v1867_v16 = vadd.f32 %v1923_v11, %v1858_v14 }
 0xd78   :  { %v1866_v17 = vadd.f32 %v1923_v11, %v1857_v15 }
 0xd79   :  { %1869 = vst.msk [vmem:[#allocation2 + $0x8] sm:$0xff] %vm58_vm0, %v1867_v16 }
 0xd7a   :  { %1868 = vst.msk [vmem:[#allocation2] sm:$0xff] %vm58_vm0, %v1866_v17 }
 0xd7b   :  { %2265 = shalt.err (!%p2262_p4)
}
 0xd7c   :  { %s2266_s27 = scalar_lea.hbm %s2697_s13, 256 }
 0xd7d   :  { %p2267_p5 = scmp.ne.s32.totalorder %s2697_s13, %s2266_s27  ;;  %p2270_p6 = scmp.lt.u32.totalorder %s2266_s27, %s2697_s13 }
 0xd7f   :  { %p2272_p7 = pnand %p2270_p6, %p2267_p5 }
 0xd81   :  { %2275 = shalt.err (!%p2272_p7)
}
 0xd82   :  { %s2295_s16 = smov 128  }
 0xd83   :  { %1881 = dma.vmem_to_hbm [thread:$0]  %s1876_s25, 256, %s2697_s13, [#allocation3], %s2295_s16, %s2295_s16, %s2291_s30  }
 0xd84   :  { %2276 = dma.done.wait [#allocation3], 256  }
 0xd85   :  { %2277 = vsyncadd [#allocation3], 4294967040 }
 0xd86   :  { %1885 = vsyncpa [#allocation3], 1 }

</bundles_post_ra>
